<compile_context>
chip_gen: v7x
topology: tpu7x:2x2x1
jax: 0.10.0
libtpu: 0.0.40
codegen_flags: <defaults>
</compile_context>

<pallas_src>
import jax
import jax.numpy as jnp
from jax.experimental import pallas as pl
from jax.experimental.pallas import tpu as pltpu


def pack_temporal_params(weight, bias, compute_dtype=jnp.bfloat16):
    """Pack PyTorch Conv1d params once (hoist out of the per-call hot path).

    weight: (C_out, C_in, 3) PyTorch layout, bias: (C_out,).
    Returns:
      w_packed: (3*C_in, C_out_pad) in compute_dtype; row block k is conv tap k
                (k=0 multiplies x[t-1], k=1 x[t], k=2 x[t+1]).
      b_packed: (1, C_out_pad) float32.
    """
    C_out, C_in, K = weight.shape
    assert K == 3, "Temporal uses kernel_size=3"
    c_pad = ((C_out + 127) // 128) * 128  # lane-dense output width

    w = jnp.transpose(weight, (2, 1, 0)).reshape(K * C_in, C_out)
    w = jnp.pad(w, ((0, 0), (0, c_pad - C_out))).astype(compute_dtype)
    b = jnp.pad(bias, (0, c_pad - C_out)).reshape(1, c_pad).astype(jnp.float32)
    return w, b


def _choose_batches_per_tile(B, T, target_rows=1024):
    """Tile rows in whole-batch groups (tile edge == batch edge -> no halo).

    Keeps tiles <= ~target_rows (fits v7x's smaller VMEM, keeps per-step
    overhead amortized), divides B evenly, and keeps the row count
    sublane-aligned.  Falls back to one tile over everything (always legal,
    block == full array).
    """
    best = B
    start = min(B, max(1, target_rows // max(T, 1)))
    for bpt in range(start, 0, -1):
        if B % bpt == 0 and (bpt * T) % 8 == 0:
            best = bpt
            break
    return best


def temporal_forward(x, w_packed, b_packed, out_channels, *,
                     compute_dtype=jnp.bfloat16, target_tile_rows=1024):
    """x: (B, T, C_in). w_packed/b_packed from pack_temporal_params."""
    B, T, C_in = x.shape
    k3_cin, c_pad = w_packed.shape
    assert k3_cin == 3 * C_in

    rows = B * T
    # Batch-major rows: row r -> (batch r // T, time r % T).
    x2 = x.reshape(rows, C_in).astype(compute_dtype)

    bpt = _choose_batches_per_tile(B, T, target_tile_rows)
    tile_rows = bpt * T
    grid = (B // bpt,)

    def kernel(x_ref, w_ref, b_ref, o_ref):
        xv = x_ref[...]  # (tile_rows, C_in) bf16, whole batches per tile.

        # Time index of each row inside its own batch (tiles start on batch
        # boundaries, so a per-tile iota is valid). Single lane column; the
        # wheres broadcast it across lanes.
        t_idx = jax.lax.broadcasted_iota(jnp.int32, (tile_rows, 1), 0) % T
        zero = jnp.zeros((), dtype=xv.dtype)

        # Shift along time. jnp.roll wraps rows within the tile; the t==0 /
        # t==T-1 masks zero exactly the conv's padding rows, which also kills
        # any wraparound / cross-batch leakage.
        x_prev = jnp.where(t_idx == 0, zero, jnp.roll(xv, 1, axis=0))
        x_next = jnp.where(t_idx == T - 1, zero, jnp.roll(xv, -1, axis=0))

        # im2col: one K = 3*C_in MXU pass instead of three K = C_in dots.
        xcat = jnp.concatenate([x_prev, xv, x_next], axis=1)
        acc = jnp.dot(xcat, w_ref[...], preferred_element_type=jnp.float32)
        acc = acc + b_ref[...]  # f32 bias, broadcast over rows.

        # Lane-dense (tile_rows, C_out_pad) store -> unmasked vst bursts.
        o_ref[...] = jnp.maximum(acc, 0.0).astype(o_ref.dtype)

    flops = 2 * rows * (3 * C_in) * c_pad
    bytes_accessed = (
        x2.size * x2.dtype.itemsize
        + w_packed.size * w_packed.dtype.itemsize
        + b_packed.size * b_packed.dtype.itemsize
        + rows * c_pad * x.dtype.itemsize
    )

    out2 = pl.pallas_call(
        kernel,
        out_shape=jax.ShapeDtypeStruct((rows, c_pad), x.dtype),
        grid=grid,
        in_specs=[
            pl.BlockSpec((tile_rows, C_in), lambda i: (i, 0)),
            pl.BlockSpec((3 * C_in, c_pad), lambda i: (0, 0)),
            pl.BlockSpec((1, c_pad), lambda i: (0, 0)),
        ],
        out_specs=pl.BlockSpec((tile_rows, c_pad), lambda i: (i, 0)),
        compiler_params=pltpu.CompilerParams(
            dimension_semantics=("parallel",),
        ),
        cost_estimate=pl.CostEstimate(
            flops=flops, transcendentals=0, bytes_accessed=int(bytes_accessed)
        ),
    )(x2, w_packed, b_packed)

    # Slice the zero-padded output lanes back to the real channel count.
    return out2[:, :out_channels].reshape(B, T, out_channels)


def temporal_forward_torch_params(x, weight, bias, **kw):
    """Convenience wrapper taking raw PyTorch-layout params (packs per call)."""
    w_packed, b_packed = pack_temporal_params(weight, bias)
    return temporal_forward(x, w_packed, b_packed, weight.shape[0], **kw)


def temporal_reference(x, weight, bias):
    """Pure-JAX reference of the PyTorch forward (for correctness check)."""
    x_ncw = jnp.transpose(x, (0, 2, 1))
    y = jax.lax.conv_general_dilated(
        x_ncw, weight,
        window_strides=(1,), padding=((1, 1),),
        dimension_numbers=("NCH", "OIH", "NCH"),
    ) + bias[None, :, None]
    y = jnp.maximum(y, 0.0)
    return jnp.transpose(y, (0, 2, 1))


if __name__ == "__main__":
    # Module config: Temporal(input_size=8, out_size=32)
    B, T, C_in, C_out = 2, 16, 8, 32

    key = jax.random.PRNGKey(0)
    kx, kw, kb = jax.random.split(key, 3)

    x = jax.random.normal(kx, (B, T, C_in), dtype=jnp.float32)
    # Deterministic parameter init (shapes match nn.Conv1d(C_in, C_out, 3)).
    weight = jax.random.normal(kw, (C_out, C_in, 3), dtype=jnp.float32) * 0.1
    bias = jax.random.normal(kb, (C_out,), dtype=jnp.float32) * 0.1

    # Pack params once (hoisted out of the forward hot path).
    w_packed, b_packed = pack_temporal_params(weight, bias)

    out = temporal_forward(x, w_packed, b_packed, C_out)
    out = jax.block_until_ready(out)

    ref = temporal_reference(x, weight, bias)
    assert out.shape == (B, T, C_out)
    # bf16 MXU operands with f32 accumulation -> loosened tolerance vs the
    # pure-f32 reference.
    assert jnp.allclose(out, ref, atol=2e-2, rtol=2e-2), "mismatch vs reference"

    print("KERNEL_OK")
</pallas_src>

<mosaic_0001>
module attributes {stable_mosaic.version = 11 : i64} {
  func.func @kernel(%arg0: i32, %arg1: memref<32x8xbf16, #tpu.memory_space<vmem>>, %arg2: memref<24x128xbf16, #tpu.memory_space<vmem>>, %arg3: memref<1x128xf32, #tpu.memory_space<vmem>>, %arg4: memref<32x128xf32, #tpu.memory_space<vmem>>) attributes {dimension_semantics = [#tpu.dimension_semantics<parallel>], iteration_bounds = array<i64: 1>, scalar_prefetch = 0 : i64, scratch_operands = 0 : i64, tpu.core_type = #tpu.core_type<tc>, window_params = [{transform_indices = @transform_0, window_bounds = array<i64: 32, 8>}, {pipeline_mode = #tpu.pipeline_mode<synchronous>, transform_indices = @transform_1, window_bounds = array<i64: 24, 128>}, {pipeline_mode = #tpu.pipeline_mode<synchronous>, transform_indices = @transform_2, window_bounds = array<i64: 1, 128>}, {transform_indices = @transform_3, window_bounds = array<i64: 32, 128>}]} {
    %c0 = arith.constant 0 : index
    %c0_0 = arith.constant 0 : index
    %0 = vector.load %arg1[%c0, %c0_0] : memref<32x8xbf16, #tpu.memory_space<vmem>>, vector<32x8xbf16>
    %1 = tpu.iota {dimensions = array<i32: 0>} : vector<32x1xi32>
    %c16_i32 = arith.constant 16 : i32
    %c0_i32 = arith.constant 0 : i32
    %2 = arith.cmpi eq, %c16_i32, %c0_i32 : i32
    %c1_i32 = arith.constant 1 : i32
    %3 = arith.select %2, %c1_i32, %c16_i32 : i32
    %4 = vector.broadcast %3 : i32 to vector<32x1xi32>
    %5 = arith.remsi %1, %4 : vector<32x1xi32>
    %c0_i32_1 = arith.constant 0 : i32
    %6 = vector.broadcast %c0_i32_1 : i32 to vector<32x1xi32>
    %7 = arith.cmpi ne, %5, %6 : vector<32x1xi32>
    %c0_i32_2 = arith.constant 0 : i32
    %8 = vector.broadcast %c0_i32_2 : i32 to vector<32x1xi32>
    %9 = arith.cmpi slt, %5, %8 : vector<32x1xi32>
    %c0_i32_3 = arith.constant 0 : i32
    %10 = arith.cmpi slt, %3, %c0_i32_3 : i32
    %11 = vector.broadcast %10 : i1 to vector<32x1xi1>
    %12 = vector.broadcast %11 : vector<32x1xi1> to vector<32x1xi1>
    %13 = arith.xori %9, %12 : vector<32x1xi1>
    %14 = arith.andi %13, %7 : vector<32x1xi1>
    %15 = vector.broadcast %3 : i32 to vector<32x1xi32>
    %16 = arith.addi %5, %15 : vector<32x1xi32>
    %17 = arith.select %14, %16, %5 : vector<32x1xi1>, vector<32x1xi32>
    %c0_i32_4 = arith.constant 0 : i32
    %18 = vector.broadcast %c0_i32_4 : i32 to vector<32x1xi32>
    %19 = arith.cmpi eq, %17, %18 : vector<32x1xi32>
    %20 = vector.extract_strided_slice %0 {offsets = [31, 0], sizes = [1, 8], strides = [1, 1]} : vector<32x8xbf16> to vector<1x8xbf16>
    %21 = vector.extract_strided_slice %0 {offsets = [0, 0], sizes = [31, 8], strides = [1, 1]} : vector<32x8xbf16> to vector<31x8xbf16>
    %22 = tpu.concatenate %20, %21 in 0 : vector<1x8xbf16>, vector<31x8xbf16> -> vector<32x8xbf16>
    %cst = arith.constant 0.000000e+00 : bf16
    %23 = vector.shape_cast %19 : vector<32x1xi1> to vector<32x1xi1>
    %24 = vector.broadcast %23 : vector<32x1xi1> to vector<32x8xi1>
    %25 = vector.broadcast %cst : bf16 to vector<32x8xbf16>
    %26 = arith.select %24, %25, %22 : vector<32x8xi1>, vector<32x8xbf16>
    %c15_i32 = arith.constant 15 : i32
    %27 = vector.broadcast %c15_i32 : i32 to vector<32x1xi32>
    %28 = arith.cmpi eq, %17, %27 : vector<32x1xi32>
    %29 = vector.extract_strided_slice %0 {offsets = [1, 0], sizes = [31, 8], strides = [1, 1]} : vector<32x8xbf16> to vector<31x8xbf16>
    %30 = vector.extract_strided_slice %0 {offsets = [0, 0], sizes = [1, 8], strides = [1, 1]} : vector<32x8xbf16> to vector<1x8xbf16>
    %31 = tpu.concatenate %29, %30 in 0 : vector<31x8xbf16>, vector<1x8xbf16> -> vector<32x8xbf16>
    %cst_5 = arith.constant 0.000000e+00 : bf16
    %32 = vector.shape_cast %28 : vector<32x1xi1> to vector<32x1xi1>
    %33 = vector.broadcast %32 : vector<32x1xi1> to vector<32x8xi1>
    %34 = vector.broadcast %cst_5 : bf16 to vector<32x8xbf16>
    %35 = arith.select %33, %34, %31 : vector<32x8xi1>, vector<32x8xbf16>
    %36 = tpu.concatenate %26, %0, %35 in 1 : vector<32x8xbf16>, vector<32x8xbf16>, vector<32x8xbf16> -> vector<32x24xbf16>
    %c0_6 = arith.constant 0 : index
    %c0_7 = arith.constant 0 : index
    %37 = vector.load %arg2[%c0_6, %c0_7] : memref<24x128xbf16, #tpu.memory_space<vmem>>, vector<24x128xbf16>
    %cst_8 = arith.constant dense<0.000000e+00> : vector<32x128xf32>
    %38 = tpu.matmul %36, %37, %cst_8 {dimension_numbers = #tpu.dot_dimension_numbers<[1], [0], [0], [1], [0, 0, 1, 1], [], []>} : vector<32x24xbf16>, vector<24x128xbf16>, vector<32x128xf32> -> vector<32x128xf32>
    %c0_9 = arith.constant 0 : index
    %c0_10 = arith.constant 0 : index
    %39 = vector.load %arg3[%c0_9, %c0_10] : memref<1x128xf32, #tpu.memory_space<vmem>>, vector<1x128xf32>
    %40 = vector.broadcast %39 : vector<1x128xf32> to vector<32x128xf32>
    %41 = arith.addf %38, %40 : vector<32x128xf32>
    %cst_11 = arith.constant 0.000000e+00 : f32
    %42 = vector.broadcast %cst_11 : f32 to vector<32x128xf32>
    %43 = arith.maximumf %41, %42 : vector<32x128xf32>
    %c0_12 = arith.constant 0 : index
    %c0_13 = arith.constant 0 : index
    %44 = vector.load %arg4[%c0_12, %c0_13] : memref<32x128xf32, #tpu.memory_space<vmem>>, vector<32x128xf32>
    tpu.vector_store %arg4[%c0_12, %c0_13], %43 {strides = array<i32>} : memref<32x128xf32, #tpu.memory_space<vmem>>, vector<32x128xf32>,
    return
  }
  func.func @transform_0(%arg0: i32) -> (i32, i32) {
    %c0_i32 = arith.constant 0 : i32
    %c0_i32_0 = arith.constant 0 : i32
    return %arg0, %c0_i32 : i32, i32
  }
  func.func @transform_1(%arg0: i32) -> (i32, i32) {
    %c0_i32 = arith.constant 0 : i32
    %c0_i32_0 = arith.constant 0 : i32
    %c0_i32_1 = arith.constant 0 : i32
    return %c0_i32, %c0_i32_0 : i32, i32
  }
  func.func @transform_2(%arg0: i32) -> (i32, i32) {
    %c0_i32 = arith.constant 0 : i32
    %c0_i32_0 = arith.constant 0 : i32
    %c0_i32_1 = arith.constant 0 : i32
    return %c0_i32, %c0_i32_0 : i32, i32
  }
  func.func @transform_3(%arg0: i32) -> (i32, i32) {
    %c0_i32 = arith.constant 0 : i32
    %c0_i32_0 = arith.constant 0 : i32
    return %arg0, %c0_i32 : i32, i32
  }
}

</mosaic_0001>

<bundles_post_ra>
// kernel: tpu_custom_call.1
= control target key start
LH: loop header
LB: loop body
LE: loop exit
PB: predicated region body
PF: predicated region fallthrough
CT: control target
= control target key end

     0   :  { %v22_v2 = vlaneseq  ;;  %vm374_vm0 = vmmov 0   ;;  %vm146_vm2 = vsmask.f32 7424  ;;  %vm160_vm3 = vcmask 1047552   ;;  %s375_s22 = smov 8   ;;  %s471_s0 = inlined_call_operand.vmem [shape: bf16[32,8], index: 0, kind: input, shape index: {}]   ;;  %s472_s1 = inlined_call_operand.vmem [shape: bf16[24,128], index: 1, kind: input, shape index: {}]   ;;  %s473_s2 = inlined_call_operand.vmem [shape: f32[1,128], index: 2, kind: input, shape index: {}]   ;;  %s474_s3 = inlined_call_operand.hbm [shape: f32[32,128], index: 3, kind: output, shape index: {}]  }
   0x1   :  { %v18_v0 = vld [vmem:[%s471_s0] sm:$0xf]  ;;  %v19_v1 = vld [vmem:[%s471_s0 + $0x4] sm:$0xf]  ;;  %v20_v5 = vld [vmem:[%s471_s0 + $0x8] sm:$0xf] }
   0x2   :  { %v313_v3 = vcombine.low %v18_v0, %v19_v1  ;;  %v317_v4 = vcombine.low %v18_v0, %v18_v0  ;;  %v21_v6 = vld [vmem:[%s471_s0 + $0xc] sm:$0xf]  ;;  %v23_v7 = vshrl.u32 %v22_v2, 7  ;;  %vm414_vm1 = vmpackc.low %vm374_vm0, %vm374_vm0  ;;  %v347_v10 = vld [vmem:[%s472_s1] sm:$0xff]   ;;  %v376_v20 = vmov 0  }
   0x3   :  { %v412_v8 = vcombine.low %v20_v5, %v21_v6  ;;  %v312_v14 = vcombine.low %v21_v6, %v21_v6  ;;  %329 = vmatprep.subr.bf16.mxu0 %v347_v10  ;;  %v129_v21 = vsel %vm414_vm1, 65537, %v376_v20  ;;  %vm428_vm4 = vmand %vm160_vm3, %vm146_vm2  ;;  %vm95_vm6 = vsmask.f32 256 }
   0x4   :  { %v156_v11 = vshll.u32 %v317_v4, 16  ;;  %189 = vrot.lane.b32.xlu0 %v313_v3, %s375_s22  ;;  %v100_v12 = vshll.u32 %v313_v3, 16  ;;  %v97_v13 = vshrl.u32 %v313_v3, 16  ;;  %v24_v15 = vadd.s32 8, %v23_v7  ;;  %330 = vmatpush3.bf16.msra.mxu0 %v347_v10 }
   0x5   :  { %v107_v16 = vshll.u32 %v412_v8, 16  ;;  %v26_v17 = vadd.s32 24, %v23_v7  ;;  %v104_v18 = vshrl.u32 %v412_v8, 16  ;;  %v31_v23 = vand.u32 15, %v23_v7 }
   0x6   :  { %v158_v19 = vrot.slane %v156_v11, 1  ;;  %v147_v22 = vrot.slane %v100_v12, 1  ;;  %v38_v24 = vand.u32 15, %v24_v15  ;;  %v99_v27 = vrot.slane %v97_v13, 7 }
   0x7   :  { %v149_v25 = vrot.slane %v107_v16, 1  ;;  %v52_v28 = vand.u32 15, %v26_v17  ;;  %vm75_vm5 = vcmp.eq.s32.totalorder %v31_v23, 0  ;;  %v83_v30 = vshrl.u32 %v312_v14, 16 }
   0x8   :  { %v148_v29 = vor.u32 %v147_v22, %v97_v13  ;;  %191 = vrot.lane.b32.xlu0 %v412_v8, %s375_s22 }
   0x9   :  { %8 = vsyncpa [#allocation3], 0  ;;  %vm143_vm7 = vcmp.eq.s32.totalorder %v38_v24, 15  ;;  %vm434_vm8 = vcmp.eq.s32.totalorder %v52_v28, 15  ;;  %v151_v32 = vor.u32 %v149_v25, %v104_v18  ;;  %vm113_vm9 = vcmask 1040384   ;;  %s378_s26 = smov [#allocation2]  }
   0xa   :  { %vm124_vm10 = vmpackc.low %vm75_vm5, %vm75_vm5  ;;  %v349_v33 = vld [vmem:[%s472_s1 + $0x8] ss:$0 sps:$4 sm:$0xff]   ;;  %v85_v34 = vrot.slane %v83_v30, 3  ;;  %v106_v37 = vrot.slane %v104_v18, 7  ;;  %v102_v39 = vor.u32 %v100_v12, %v99_v27  ;;  %v150_v40 = vsel %vm146_vm2, %v148_v29, %v149_v25  ;;  %s377_s1 = smov 16   ;;  %s301_s27 = sshll.u32 %s378_s26, 4  ;;  %s302_s27 = int_to_ptr.vmem [resolvable:$true] %s301_s27 }
   0xb   :  { %vm172_vm11 = vmpackc.low %vm143_vm7, %vm143_vm7  ;;  %v128_v35 = vsel %vm124_vm10, 65537, %v376_v20  ;;  %vm235_vm14 = vcmask 1043456   ;;  %v162_v43 = vsel %vm428_vm4, %v151_v32, %v158_v19  ;;  %v25_v49 = vadd.s32 16, %v23_v7  ;;  %v320_v2 = vld [vmem:[%s473_s2] ss:$0 sm:$0xff]  ;;  %s350_s2 = scalar_lea.vmem %s302_s27, 512  ;;  %p355_p1 = scmp.lt.s32.totalorder %s302_s27, %s302_s27 }
   0xc   :  { %v176_v36 = vsel %vm172_vm11, 65537, %v376_v20  ;;  %vm174_vm12 = vmpackc.low %vm434_vm8, %vm434_vm8  ;;  %v315_v38 = vcombine.low %v128_v35, %v129_v21  ;;  %337 = vmatprep.subr.msk.bf16.mxu0 %vm235_vm14, %v349_v33  ;;  %v237_v48 = vsel %vm235_vm14, %v349_v33, 0  ;;  %v109_v51 = vor.u32 %v107_v16, %v106_v37  ;;  %p351_p0 = scmp.ne.s32.totalorder %s302_s27, %s350_s2  ;;  %p356_p2 = scmp.lt.s32.totalorder %s350_s2, %s350_s2 }
   0xd   :  { %v318_v41 = vcombine.low %v129_v21, %v176_v36  ;;  %v178_v42 = vsel %vm174_vm12, 65537, %v376_v20  ;;  %vm114_vm13 = vmand %vm113_vm9, %vm95_vm6  ;;  %332 = vmatpush3.bf16.msra.mxu0 %v237_v48  ;;  %v45_v52 = vand.u32 15, %v25_v49  ;;  %vm199_vm5 = vcmask 64512  }
   0xe   :  { %v319_v44 = vcombine.low %v129_v21, %v178_v42  ;;  %vm448_vm15 = vcmp.ne.s16.totalorder %v315_v38, 0  ;;  %v115_v46 = vsel %vm114_vm13, %v85_v34, %v102_v39  ;;  %v110_v54 = vsel %vm95_vm6, %v99_v27, %v109_v51  ;;  %p357_p3 = por %p356_p2, %p355_p1 }
   0xf   :  { %vm185_vm0 = vcmp.ne.s16.totalorder %v318_v41, 0  ;;  %v140_v47 = vsel %vm448_vm15, 0, %v115_v46  ;;  %vm77_vm2 = vcmp.eq.s32.totalorder %v45_v52, 0  ;;  %vm206_vm7 = vcmask 130048  }
  0x10   :  { %v187_v50 = vsel %vm185_vm0, 0, %v150_v40  ;;  %vm186_vm1 = vcmp.ne.s16.totalorder %v319_v44, 0  ;;  %vm126_vm3 = vmpackc.low %vm77_vm2, %vm77_vm2  ;;  %vm230_vm8 = vcmask 195584   ;;  %p358_p4 = pnand %p357_p3, %p351_p0 }
  0x11   :  { %195 = vrot.lane.b32.xlu1 %v187_v50, %s377_s1  ;;  %v188_v53 = vsel %vm186_vm1, 0, %v162_v43  ;;  %v130_v55 = vsel %vm126_vm3, 65537, %v376_v20 }
  0x12   :  { %v316_v56 = vcombine.low %v130_v55, %v129_v21 }
  0x14   :  { %vm139_vm4 = vcmp.ne.s16.totalorder %v316_v56, 0 }
  0x15   :  { %197 = vrot.lane.b32.xlu1 %v188_v53, %s377_s1  ;;  %v141_v57 = vsel %vm139_vm4, 0, %v110_v54 }
  0x76   :  { %v190_v58 = vpop.permute.xlu0 %189 }
  0x77   :  { %v202_v59 = vsel %vm199_vm5, %v140_v47, %v190_v58 }
  0x7a   :  { %v192_v60 = vpop.permute.xlu0 %191 }
  0x7b   :  { %v205_v63 = vsel %vm199_vm5, %v141_v57, %v192_v60 }
  0x83   :  { %v196_v61 = vpop.permute.xlu1 %195 }
  0x84   :  { %v208_v62 = vsel %vm206_vm7, %v202_v59, %v196_v61 }
  0x85   :  { %333 = vmatprep.mubr.msk.bf16.mxu0 %vm230_vm8, %v208_v62 }
  0x87   :  { %v198_v0 = vpop.permute.xlu1 %197 }
  0x88   :  { %v210_v1 = vsel %vm206_vm7, %v205_v63, %v198_v0 }
  0x89   :  { %334 = vmatmul.mubr.msk.bf16.vlgmr.msra.gmra.mrb[0].mxu0 %vm230_vm8, %v210_v1 }
 0x15c   :  { %v335_v3 = vpop.f32.mrb[0].mxu0 }
 0x15d   :  { %v282_v4 = vadd.f32 %v335_v3, %v320_v2  ;;  %v273_v5 = vpop.f32.mrb[1].mxu0 }
 0x15e   :  { %v274_v6 = vadd.f32 %v320_v2, %v273_v5  ;;  %v336_v7 = vpop.f32.mrb[2].mxu0 }
 0x15f   :  { %v290_v8 = vmax.f32 %v282_v4, 0.0  ;;  %v285_v9 = vadd.f32 %v336_v7, %v320_v2  ;;  %v276_v10 = vpop.f32.mrb[3].mxu0 }
 0x160   :  { %v288_v11 = vmax.f32 %v274_v6, 0.0  ;;  %v277_v12 = vadd.f32 %v320_v2, %v276_v10 }
 0x161   :  { %294 = vst [vmem:[#allocation2 + $0x10] sm:$0xff] %v290_v8  ;;  %v291_v13 = vmax.f32 %v285_v9, 0.0 }
 0x162   :  { %292 = vst [vmem:[#allocation2] sm:$0xff] %v288_v11  ;;  %v289_v14 = vmax.f32 %v277_v12, 0.0 }
 0x163   :  { %295 = vst [vmem:[#allocation2 + $0x18] sm:$0xff] %v291_v13 }
 0x164   :  { %293 = vst [vmem:[#allocation2 + $0x8] sm:$0xff] %v289_v14 }
 0x165   :  { %361 = shalt.err (!%p358_p4)
}
 0x166   :  { %s362_s30 = scalar_lea.hbm %s474_s3, 512 }
 0x167   :  { %p363_p5 = scmp.ne.s32.totalorder %s474_s3, %s362_s30  ;;  %p366_p6 = scmp.lt.u32.totalorder %s362_s30, %s474_s3 }
 0x169   :  { %p368_p7 = pnand %p366_p6, %p363_p5 }
 0x16b   :  { %371 = shalt.err (!%p368_p7)
}
 0x16c   :  { %s379_s8 = smov 128  }
 0x16d   :  { %307 = dma.vmem_to_hbm [thread:$0]  %s302_s27, 512, %s474_s3, [#allocation3], %s379_s8, %s379_s8, %s375_s22  }
 0x16e   :  { %372 = dma.done.wait [#allocation3], 512  }
 0x16f   :  { %373 = vsyncadd [#allocation3], 4294966784 }
 0x170   :  { %311 = vsyncpa [#allocation3], 1 }

</bundles_post_ra>
